<compile_context>
chip_gen: v7x
topology: tpu7x:2x2x1
jax: 0.10.0
libtpu: 0.0.40
codegen_flags: <defaults>
</compile_context>

<pallas_src>
import functools
import math

import jax
import jax.numpy as jnp
from jax import lax
from jax.experimental import pallas as pl
from jax.experimental.pallas import tpu as pltpu

HIDDEN = 128          # shared-layer width (also the fused-head lane width)
HEAD_LANES = 128      # lane-dense fused head / output width
TB_DEFAULT = 2048     # max batch tile (sweepable); ~8 MiB/step working set
MIN_GRID_STEPS = 4    # keep >= 4 grid steps so both v7x TensorCores get work


def _round_up(n, m):
    return ((n + m - 1) // m) * m


def _actor_critic_kernel(num_actions, x_ref, w1_ref, b1_ref, w2_ref, b2_ref,
                         wh_ref, bh_ref, out_ref):
    # x tile: (TB, K) f32, K at full extent (no wrapper-side padding).
    x = x_ref[...]

    # Shared layers: Linear -> ReLU -> Linear -> ReLU (MXU matmuls, f32 acc).
    h1 = jnp.dot(x, w1_ref[...], preferred_element_type=jnp.float32) + b1_ref[...]
    h1 = jnp.maximum(h1, 0.0)
    h2 = jnp.dot(h1, w2_ref[...], preferred_element_type=jnp.float32) + b2_ref[...]
    h2 = jnp.maximum(h2, 0.0)

    # Fused actor+critic head: one lane-dense (TB, 128) matmul.
    #   lanes [0, A)  -> actor logits
    #   lane  A       -> critic value
    #   lanes (A,128) -> zero (zero weight/bias columns)
    heads = jnp.dot(h2, wh_ref[...], preferred_element_type=jnp.float32) + bh_ref[...]

    lane = lax.broadcasted_iota(jnp.int32, heads.shape, 1)
    is_logit = lane < num_actions

    # Numerically-stable softmax over the actor lanes only.
    logits = jnp.where(is_logit, heads, -jnp.inf)
    m = jnp.max(logits, axis=-1, keepdims=True)
    e = jnp.exp(logits - m)                          # masked lanes contribute 0
    denom = jnp.sum(e, axis=-1, keepdims=True)
    probs = e * pl.reciprocal(denom, approx=False)   # EUP slot, exact

    # Lane-dense (TB, 128) output slab: probs in actor lanes, critic value in
    # lane A, zeros after.  No masked partial stores.
    out_ref[...] = jnp.where(is_logit, probs, heads)


def prepare_params(params, num_actions):
    """One-time parameter prep: pack actor+critic into one (128,128) head.

    Call at init / after each optimizer update (NOT on every forward pass)."""
    A = num_actions
    assert A + 1 <= HEAD_LANES, "fused head requires num_actions + 1 <= 128"
    wa, ba = params["wa"], params["ba"]
    wc, bc = params["wc"], params["bc"]
    wh = jnp.zeros((HIDDEN, HEAD_LANES), jnp.float32)
    wh = wh.at[:, :A].set(wa).at[:, A].set(wc[:, 0])
    bh = jnp.zeros((1, HEAD_LANES), jnp.float32)
    bh = bh.at[:, :A].set(ba[0]).at[:, A].set(bc[0, 0])
    return dict(w1=params["w1"], b1=params["b1"],
                w2=params["w2"], b2=params["b2"],
                wh=wh, bh=bh, num_actions=A)


def actor_critic_forward(x, prepared, *, tb=None):
    """x: (B, num_inputs) float32. prepared: output of prepare_params().

    Returns (action_probs: (B, num_actions), state_values: (B, 1)).
    """
    B, K = x.shape
    A = prepared["num_actions"]

    # --- batch tiling (no padding; ragged final tile is masked by Pallas) ---
    if tb is None:
        # Large tile to amortize ~0.35 us/step overhead, but at least
        # MIN_GRID_STEPS steps so v7x's 2 TCs both get batch shards.
        tb = max(8, min(TB_DEFAULT, _round_up(pl.cdiv(B, MIN_GRID_STEPS), 8)))
    tb = max(8, _round_up(tb, 8))

    grid = (pl.cdiv(B, tb),)

    def const2d(shape):
        return pl.BlockSpec(shape, lambda i: (0, 0))

    in_specs = [
        # x: tiled over batch only; K stays full-extent (MXU handles K < 128).
        # If profiling on v7x shows exposed input DMA, add
        # pipeline_mode=pl.Buffered(3) to this spec only.
        pl.BlockSpec((tb, K), lambda i: (i, 0)),
        const2d((K, HIDDEN)),                          # w1 (VMEM-resident)
        const2d((1, HIDDEN)),                          # b1
        const2d((HIDDEN, HIDDEN)),                     # w2
        const2d((1, HIDDEN)),                          # b2
        const2d((HIDDEN, HEAD_LANES)),                 # fused head weight
        const2d((1, HEAD_LANES)),                      # fused head bias
    ]
    out_spec = pl.BlockSpec((tb, HEAD_LANES), lambda i: (i, 0))

    out = pl.pallas_call(
        functools.partial(_actor_critic_kernel, A),
        out_shape=jax.ShapeDtypeStruct((B, HEAD_LANES), jnp.float32),
        grid=grid,
        in_specs=in_specs,
        out_specs=out_spec,
        compiler_params=pltpu.CompilerParams(
            dimension_semantics=("parallel",),        # shards over v7x's 2 TCs
            vmem_limit_bytes=32 * 1024 * 1024,        # safe on v5e/v6e/v7x
        ),
    )(x, prepared["w1"], prepared["b1"], prepared["w2"], prepared["b2"],
      prepared["wh"], prepared["bh"])

    probs = out[:, :A]
    values = out[:, A:A + 1]
    return probs, values


def init_params(key, num_inputs, num_actions):
    """Deterministic init mimicking nn.Linear's default U(-1/sqrt(fan_in), +)."""
    def linear(k, fan_in, fan_out):
        kw, kb = jax.random.split(k)
        bound = 1.0 / math.sqrt(fan_in)
        w = jax.random.uniform(kw, (fan_in, fan_out), jnp.float32, -bound, bound)
        b = jax.random.uniform(kb, (1, fan_out), jnp.float32, -bound, bound)
        return w, b

    k1, k2, k3, k4 = jax.random.split(key, 4)
    w1, b1 = linear(k1, num_inputs, HIDDEN)
    w2, b2 = linear(k2, HIDDEN, HIDDEN)
    wa, ba = linear(k3, HIDDEN, num_actions)
    wc, bc = linear(k4, HIDDEN, 1)
    return dict(w1=w1, b1=b1, w2=w2, b2=b2, wa=wa, ba=ba, wc=wc, bc=bc)


def reference_forward(x, p):
    h1 = jnp.maximum(x @ p["w1"] + p["b1"], 0.0)
    h2 = jnp.maximum(h1 @ p["w2"] + p["b2"], 0.0)
    probs = jax.nn.softmax(h2 @ p["wa"] + p["ba"], axis=-1)
    values = h2 @ p["wc"] + p["bc"]
    return probs, values


if __name__ == "__main__":
    key = jax.random.PRNGKey(0)
    kx, kp = jax.random.split(key)

    batch = 32
    num_inputs = 64     # small synthetic state size (full-extent K, no padding)
    num_actions = 10    # small synthetic action space

    x = jax.random.normal(kx, (batch, num_inputs), dtype=jnp.float32)
    params = init_params(kp, num_inputs, num_actions)
    prepared = prepare_params(params, num_actions)      # one-time head fusion

    # Default adaptive tile -> tb=8, a 4-step batch grid even at demo size.
    probs, values = actor_critic_forward(x, prepared)
    jax.block_until_ready((probs, values))

    # correctness check vs pure-JAX reference
    ref_probs, ref_values = reference_forward(x, params)
    assert probs.shape == (batch, num_actions)
    assert values.shape == (batch, 1)
    assert jnp.allclose(probs, ref_probs, atol=1e-5, rtol=1e-5)
    assert jnp.allclose(values, ref_values, atol=1e-5, rtol=1e-5)
    assert jnp.allclose(jnp.sum(probs, axis=-1), 1.0, atol=1e-5)

    # Ragged final batch tile (no wrapper-side batch padding): B=30 with tb=8.
    x_r = x[:30]
    probs_r, values_r = actor_critic_forward(x_r, prepared, tb=8)
    jax.block_until_ready((probs_r, values_r))
    assert jnp.allclose(probs_r, ref_probs[:30], atol=1e-5, rtol=1e-5)
    assert jnp.allclose(values_r, ref_values[:30], atol=1e-5, rtol=1e-5)

    print("KERNEL_OK")
</pallas_src>

<mosaic_0001>
module attributes {stable_mosaic.version = 11 : i64} {
  func.func @_actor_critic_kernel(%arg0: i32, %arg1: memref<8x64xf32, #tpu.memory_space<vmem>>, %arg2: memref<64x128xf32, #tpu.memory_space<vmem>>, %arg3: memref<1x128xf32, #tpu.memory_space<vmem>>, %arg4: memref<128x128xf32, #tpu.memory_space<vmem>>, %arg5: memref<1x128xf32, #tpu.memory_space<vmem>>, %arg6: memref<128x128xf32, #tpu.memory_space<vmem>>, %arg7: memref<1x128xf32, #tpu.memory_space<vmem>>, %arg8: memref<8x128xf32, #tpu.memory_space<vmem>>) attributes {dimension_semantics = [#tpu.dimension_semantics<parallel>], iteration_bounds = array<i64: 4>, scalar_prefetch = 0 : i64, scratch_operands = 0 : i64, tpu.core_type = #tpu.core_type<tc>, window_params = [{transform_indices = @transform_0, window_bounds = array<i64: 8, 64>}, {pipeline_mode = #tpu.pipeline_mode<synchronous>, transform_indices = @transform_1, window_bounds = array<i64: 64, 128>}, {pipeline_mode = #tpu.pipeline_mode<synchronous>, transform_indices = @transform_2, window_bounds = array<i64: 1, 128>}, {pipeline_mode = #tpu.pipeline_mode<synchronous>, transform_indices = @transform_3, window_bounds = array<i64: 128, 128>}, {pipeline_mode = #tpu.pipeline_mode<synchronous>, transform_indices = @transform_4, window_bounds = array<i64: 1, 128>}, {pipeline_mode = #tpu.pipeline_mode<synchronous>, transform_indices = @transform_5, window_bounds = array<i64: 128, 128>}, {pipeline_mode = #tpu.pipeline_mode<synchronous>, transform_indices = @transform_6, window_bounds = array<i64: 1, 128>}, {transform_indices = @transform_7, window_bounds = array<i64: 8, 128>}]} {
    %c0 = arith.constant 0 : index
    %c0_0 = arith.constant 0 : index
    %0 = vector.load %arg1[%c0, %c0_0] : memref<8x64xf32, #tpu.memory_space<vmem>>, vector<8x64xf32>
    %c0_1 = arith.constant 0 : index
    %c0_2 = arith.constant 0 : index
    %1 = vector.load %arg2[%c0_1, %c0_2] : memref<64x128xf32, #tpu.memory_space<vmem>>, vector<64x128xf32>
    %cst = arith.constant dense<0.000000e+00> : vector<8x128xf32>
    %2 = tpu.matmul %0, %1, %cst {dimension_numbers = #tpu.dot_dimension_numbers<[1], [0], [0], [1], [0, 0, 1, 1], [], []>} : vector<8x64xf32>, vector<64x128xf32>, vector<8x128xf32> -> vector<8x128xf32>
    %c0_3 = arith.constant 0 : index
    %c0_4 = arith.constant 0 : index
    %3 = vector.load %arg3[%c0_3, %c0_4] : memref<1x128xf32, #tpu.memory_space<vmem>>, vector<1x128xf32>
    %4 = vector.broadcast %3 : vector<1x128xf32> to vector<8x128xf32>
    %5 = arith.addf %2, %4 : vector<8x128xf32>
    %cst_5 = arith.constant 0.000000e+00 : f32
    %6 = vector.broadcast %cst_5 : f32 to vector<8x128xf32>
    %7 = arith.maximumf %5, %6 : vector<8x128xf32>
    %c0_6 = arith.constant 0 : index
    %c0_7 = arith.constant 0 : index
    %8 = vector.load %arg4[%c0_6, %c0_7] : memref<128x128xf32, #tpu.memory_space<vmem>>, vector<128x128xf32>
    %cst_8 = arith.constant dense<0.000000e+00> : vector<8x128xf32>
    %9 = tpu.matmul %7, %8, %cst_8 {dimension_numbers = #tpu.dot_dimension_numbers<[1], [0], [0], [1], [0, 0, 1, 1], [], []>} : vector<8x128xf32>, vector<128x128xf32>, vector<8x128xf32> -> vector<8x128xf32>
    %c0_9 = arith.constant 0 : index
    %c0_10 = arith.constant 0 : index
    %10 = vector.load %arg5[%c0_9, %c0_10] : memref<1x128xf32, #tpu.memory_space<vmem>>, vector<1x128xf32>
    %11 = vector.broadcast %10 : vector<1x128xf32> to vector<8x128xf32>
    %12 = arith.addf %9, %11 : vector<8x128xf32>
    %cst_11 = arith.constant 0.000000e+00 : f32
    %13 = vector.broadcast %cst_11 : f32 to vector<8x128xf32>
    %14 = arith.maximumf %12, %13 : vector<8x128xf32>
    %c0_12 = arith.constant 0 : index
    %c0_13 = arith.constant 0 : index
    %15 = vector.load %arg6[%c0_12, %c0_13] : memref<128x128xf32, #tpu.memory_space<vmem>>, vector<128x128xf32>
    %cst_14 = arith.constant dense<0.000000e+00> : vector<8x128xf32>
    %16 = tpu.matmul %14, %15, %cst_14 {dimension_numbers = #tpu.dot_dimension_numbers<[1], [0], [0], [1], [0, 0, 1, 1], [], []>} : vector<8x128xf32>, vector<128x128xf32>, vector<8x128xf32> -> vector<8x128xf32>
    %c0_15 = arith.constant 0 : index
    %c0_16 = arith.constant 0 : index
    %17 = vector.load %arg7[%c0_15, %c0_16] : memref<1x128xf32, #tpu.memory_space<vmem>>, vector<1x128xf32>
    %18 = vector.broadcast %17 : vector<1x128xf32> to vector<8x128xf32>
    %19 = arith.addf %16, %18 : vector<8x128xf32>
    %20 = tpu.iota {dimensions = array<i32: 1>} : vector<8x128xi32>
    %c10_i32 = arith.constant 10 : i32
    %21 = vector.broadcast %c10_i32 : i32 to vector<8x128xi32>
    %22 = arith.cmpi slt, %20, %21 : vector<8x128xi32>
    %cst_17 = arith.constant 0xFF800000 : f32
    %23 = vector.broadcast %cst_17 : f32 to vector<8x128xf32>
    %24 = arith.select %22, %19, %23 : vector<8x128xi1>, vector<8x128xf32>
    %cst_18 = arith.constant dense<0xFF800000> : vector<8xf32>
    %25 = vector.multi_reduction <maximumf>, %24, %cst_18 [1] : vector<8x128xf32> to vector<8xf32>
    %26 = vector.shape_cast %25 : vector<8xf32> to vector<8x1xf32>
    %27 = vector.broadcast %26 : vector<8x1xf32> to vector<8x128xf32>
    %28 = arith.subf %24, %27 : vector<8x128xf32>
    %29 = math.exp %28 : vector<8x128xf32>
    %cst_19 = arith.constant dense<0.000000e+00> : vector<8xf32>
    %30 = vector.multi_reduction <add>, %29, %cst_19 [1] : vector<8x128xf32> to vector<8xf32>
    %31 = vector.shape_cast %30 : vector<8xf32> to vector<8x1xf32>
    %32 = tpu.reciprocal %31 : vector<8x1xf32> -> vector<8x1xf32>
    %33 = vector.broadcast %32 : vector<8x1xf32> to vector<8x128xf32>
    %34 = arith.mulf %29, %33 : vector<8x128xf32>
    %35 = arith.select %22, %34, %19 : vector<8x128xi1>, vector<8x128xf32>
    %c0_20 = arith.constant 0 : index
    %c0_21 = arith.constant 0 : index
    %36 = vector.load %arg8[%c0_20, %c0_21] : memref<8x128xf32, #tpu.memory_space<vmem>>, vector<8x128xf32>
    tpu.vector_store %arg8[%c0_20, %c0_21], %35 {strides = array<i32>} : memref<8x128xf32, #tpu.memory_space<vmem>>, vector<8x128xf32>,
    return
  }
  func.func @transform_0(%arg0: i32) -> (i32, i32) {
    %c0_i32 = arith.constant 0 : i32
    %c0_i32_0 = arith.constant 0 : i32
    return %arg0, %c0_i32 : i32, i32
  }
  func.func @transform_1(%arg0: i32) -> (i32, i32) {
    %c0_i32 = arith.constant 0 : i32
    %c0_i32_0 = arith.constant 0 : i32
    %c0_i32_1 = arith.constant 0 : i32
    return %c0_i32, %c0_i32_0 : i32, i32
  }
  func.func @transform_2(%arg0: i32) -> (i32, i32) {
    %c0_i32 = arith.constant 0 : i32
    %c0_i32_0 = arith.constant 0 : i32
    %c0_i32_1 = arith.constant 0 : i32
    return %c0_i32, %c0_i32_0 : i32, i32
  }
  func.func @transform_3(%arg0: i32) -> (i32, i32) {
    %c0_i32 = arith.constant 0 : i32
    %c0_i32_0 = arith.constant 0 : i32
    %c0_i32_1 = arith.constant 0 : i32
    return %c0_i32, %c0_i32_0 : i32, i32
  }
  func.func @transform_4(%arg0: i32) -> (i32, i32) {
    %c0_i32 = arith.constant 0 : i32
    %c0_i32_0 = arith.constant 0 : i32
    %c0_i32_1 = arith.constant 0 : i32
    return %c0_i32, %c0_i32_0 : i32, i32
  }
  func.func @transform_5(%arg0: i32) -> (i32, i32) {
    %c0_i32 = arith.constant 0 : i32
    %c0_i32_0 = arith.constant 0 : i32
    %c0_i32_1 = arith.constant 0 : i32
    return %c0_i32, %c0_i32_0 : i32, i32
  }
  func.func @transform_6(%arg0: i32) -> (i32, i32) {
    %c0_i32 = arith.constant 0 : i32
    %c0_i32_0 = arith.constant 0 : i32
    %c0_i32_1 = arith.constant 0 : i32
    return %c0_i32, %c0_i32_0 : i32, i32
  }
  func.func @transform_7(%arg0: i32) -> (i32, i32) {
    %c0_i32 = arith.constant 0 : i32
    %c0_i32_0 = arith.constant 0 : i32
    return %arg0, %c0_i32 : i32, i32
  }
}

</mosaic_0001>

<bundles_post_ra>
// kernel: tpu_custom_call.1
= control target key start
LH: loop header
LB: loop body
LE: loop exit
PB: predicated region body
PF: predicated region fallthrough
CT: control target
= control target key end

     0   :  { %12 = vsyncpa [#allocation3], 0  ;;  %s1586_s0 = inlined_call_operand.hbm [shape: f32[32,64], index: 0, kind: input, shape index: {}]   ;;  %s1587_s1 = inlined_call_operand.hbm [shape: f32[64,128], index: 1, kind: input, shape index: {}]   ;;  %s1588_s2 = inlined_call_operand.vmem [shape: f32[1,128], index: 2, kind: input, shape index: {}]   ;;  %s1589_s3 = inlined_call_operand.hbm [shape: f32[128,128], index: 3, kind: input, shape index: {}]   ;;  %s1590_s4 = inlined_call_operand.vmem [shape: f32[1,128], index: 4, kind: input, shape index: {}]   ;;  %s1591_s5 = inlined_call_operand.hbm [shape: f32[128,128], index: 5, kind: input, shape index: {}]   ;;  %s1592_s6 = inlined_call_operand.vmem [shape: f32[1,128], index: 6, kind: input, shape index: {}]   ;;  %s1593_s7 = inlined_call_operand.hbm [shape: f32[32,128], index: 7, kind: output, shape index: {}]  }
   0x1   :  { %14 = vsyncpa [#allocation3 + $0x1], 0 }
   0x2   :  { %15 = vsyncpa [#allocation6], 0 }
   0x3   :  { %16 = vsyncpa [#allocation9], 0 }
   0x4   :  { %17 = vsyncpa [#allocation4], 0 }
   0x5   :  { %19 = vsyncpa [#allocation4 + $0x1], 0  ;;  %s1284_s24 = smov 0   ;;  %s1286_s25 = smov 0  }
   0x6   :  { %s1288_s26 = smov 0   ;;  %s1290_s27 = smov 0  }
   0x7 LB: > { %s1305_s28 = sadd.s32 4294967295, %s1232_s27   ;;  %s744_s29 = sadd.s32 4294967294, %s1232_s27   ;;  %s1232_s27 = sphi %s1290_s27, %s1618_s27   ;;  %s1228_s26 = sphi %s1288_s26, %s1617_s26   ;;  %s1224_s25 = sphi %s1286_s25, %s1616_s25   ;;  %s1220_s24 = sphi %s1284_s24, %s1615_s24  }
   0x8   : > { %p45_p0 = scmp.ne.s32.totalorder %s1224_s25, %s1220_s24  ;;  %p1594_p1 = scmp.eq.s32.totalorder %s1305_s28, 0 }
   0x9   : > { %p201_p3 = scmp.eq.s32.totalorder %s744_s29, 3  ;;  %p745_p5 = scmp.ge.s32.totalorder %s1232_s27, 1 }
   0xa   : > { %p1314_p4 = por %p1594_p1, %p45_p0  ;;  %p208_p7 = scmp.lt.s32.totalorder %s1232_s27, 5 }
   0xb   : > { %p1319_p6 = por %p201_p3, %p45_p0  ;;  %s1234_s10 = smov [#allocation5]  }
   0xc   : > { %s1598_s30 = scalar_select %p1314_p4, 1, 0 }
   0xd   : > { %s1599_s8 = scalar_select %p1319_p6, 1, 0 }
   0xe   : > { %p1324_p8 = pnand %p745_p5, %p208_p7  ;;  %s220_s11 = sshll.u32 %s1234_s10, 4  ;;  %s1328_s11 = int_to_ptr.vmem [resolvable:$true] %s220_s11 }
   0xf   : > { %1600 = sst [smem:[#allocation15_spill]] %s1599_s8  ;;  %s1235_s13 = smov [#allocation7]  }
  0x10   : > { %s1601_s9 = scalar_select %p1324_p8, 1, 0 }
  0x11   : > { %p974_p9 = pneg %p1324_p8  ;;  %s236_s14 = sshll.u32 %s1235_s13, 4  ;;  %s1338_s14 = int_to_ptr.vmem [resolvable:$true] %s236_s14 }
  0x12   : > { %s1236_s15 = smov [#allocation8]   ;;  %s1044_s19 = scalar_lea.hbm %s1587_s1, 1024 }
  0x13   : > { %p1334_p10 = pnand %p974_p9, %p1594_p1  ;;  %s1340_s16 = sshll.u32 %s1236_s15, 4  ;;  %s253_s16 = int_to_ptr.vmem [resolvable:$true] %s1340_s16 }
  0x14   : > { %p1045_p11 = scmp.ne.s32.totalorder %s1587_s1, %s1044_s19  ;;  %p1051_p3 = scmp.lt.u32.totalorder %s1044_s19, %s1587_s1 }
  0x15   : > { %p1350_p12 = pneg %p1334_p10 }
  0x17   : > { %p1047_p13 = pnand %p1350_p12, %p1045_p11 }
  0x19   : > { %p1048_p0 = pneg %p1047_p13 }
  0x1b   : > { %p1053_p5 = pnand %p1051_p3, %p1048_p0 }
  0x1d   : > { %1056 = shalt.err (!%p1053_p5)
}
  0x1e   : > { %s1057_s10 = scalar_lea.vmem %s1328_s11, 1024  ;;  %p1065_p2 = scmp.lt.s32.totalorder %s1328_s11, %s1328_s11 }
  0x1f   : > { %p1058_p7 = scmp.ne.s32.totalorder %s1328_s11, %s1057_s10  ;;  %p1066_p6 = scmp.lt.s32.totalorder %s1057_s10, %s1057_s10 }
  0x21   : > { %p1060_p9 = pnand %p1058_p7, %p1350_p12  ;;  %p1067_p11 = por %p1066_p6, %p1065_p2 }
  0x23   : > { %p1061_p1 = pneg %p1060_p9 }
  0x25   : > { %p1068_p13 = pnand %p1067_p11, %p1061_p1 }
  0x27   : > { %1071 = shalt.err (!%p1068_p13)
}
  0x28   : > { %s1237_s13 = smov 128   ;;  %s1238_s15 = smov 8  }
  0x29   : > { %977 = dma.hbm_to_vmem [thread:$0]  (!%p1334_p10), %s1587_s1, 1024, %s1328_s11, [#allocation6], %s1237_s13, %s1237_s13, %s1238_s15  }
  0x2a   : > { %s1072_s21 = scalar_lea.hbm %s1589_s3, 2048 }
  0x2b   : > { %p1073_p1 = scmp.ne.s32.totalorder %s1589_s3, %s1072_s21  ;;  %p1079_p0 = scmp.lt.u32.totalorder %s1072_s21, %s1589_s3 }
  0x2d   : > { %p1075_p2 = pnand %p1073_p1, %p1350_p12 }
  0x2f   : > { %p1076_p6 = pneg %p1075_p2 }
  0x31   : > { %p1081_p3 = pnand %p1079_p0, %p1076_p6 }
  0x33   : > { %1084 = shalt.err (!%p1081_p3)
}
  0x34   : > { %s1085_s11 = scalar_lea.vmem %s1338_s14, 2048  ;;  %p1093_p11 = scmp.lt.s32.totalorder %s1338_s14, %s1338_s14 }
  0x35   : > { %p1086_p5 = scmp.ne.s32.totalorder %s1338_s14, %s1085_s11  ;;  %p1094_p13 = scmp.lt.s32.totalorder %s1085_s11, %s1085_s11 }
  0x37   : > { %p1088_p7 = pnand %p1086_p5, %p1350_p12  ;;  %p1095_p1 = por %p1094_p13, %p1093_p11 }
  0x39   : > { %p1089_p9 = pneg %p1088_p7 }
  0x3b   : > { %p1096_p2 = pnand %p1095_p1, %p1089_p9 }
  0x3d   : > { %1099 = shalt.err (!%p1096_p2)
}
  0x3e   : > { %980 = dma.hbm_to_vmem [thread:$0]  (!%p1334_p10), %s1589_s3, 2048, %s1338_s14, [#allocation6], %s1237_s13, %s1237_s13, %s1238_s15  }
  0x3f   : > { %s1100_s20 = scalar_lea.hbm %s1591_s5, 2048 }
  0x40   : > { %p1101_p6 = scmp.ne.s32.totalorder %s1591_s5, %s1100_s20  ;;  %p1107_p5 = scmp.lt.u32.totalorder %s1100_s20, %s1591_s5 }
  0x42   : > { %p1103_p0 = pnand %p1101_p6, %p1350_p12 }
  0x44   : > { %p1104_p3 = pneg %p1103_p0 }
  0x46   : > { %p1109_p7 = pnand %p1107_p5, %p1104_p3 }
  0x48   : > { %1112 = shalt.err (!%p1109_p7)
}
  0x49   : > { %s1113_s11 = scalar_lea.vmem %s253_s16, 2048  ;;  %p1121_p1 = scmp.lt.s32.totalorder %s253_s16, %s253_s16 }
  0x4a   : > { %p1114_p9 = scmp.ne.s32.totalorder %s253_s16, %s1113_s11  ;;  %p1122_p2 = scmp.lt.s32.totalorder %s1113_s11, %s1113_s11 }
  0x4c   : > { %p1116_p11 = pnand %p1114_p9, %p1350_p12  ;;  %p1123_p4 = por %p1122_p2, %p1121_p1 }
  0x4e   : > { %p1117_p13 = pneg %p1116_p11 }
  0x50   : > { %p1124_p8 = pnand %p1123_p4, %p1117_p13 }
  0x52   : > { %1127 = shalt.err (!%p1124_p8)
}
  0x53   : > { %983 = dma.hbm_to_vmem [thread:$0]  (!%p1334_p10), %s1591_s5, 2048, %s253_s16, [#allocation9], %s1237_s13, %s1237_s13, %s1238_s15  }
  0x54   : > { %s1423_s22 = sadd.s32 1, %s1232_s27   ;;  %s32_s17 = sadd.s32 1, %s1228_s26 }
  0x55   : > { %s29_s12 = ssub.s32 %s1232_s27, %s1423_s22  ;;  %p39_p8 = scmp.ne.s32.totalorder %s1228_s26, %s1224_s25 }
  0x56   : > { %p30_p4 = scmp.eq.s32.totalorder %s29_s12, 0  ;;  %p40_p12 = scmp.eq.s32.totalorder %s1232_s27, 0 }
  0x57   : > { %p995_p6 = scmp.lt.s32.totalorder %s1232_s27, 4  ;;  %p1604_p3 = scmp.eq.s32.totalorder %s1305_s28, 3 }
  0x58   : > { %s1433_s18 = scalar_select %p30_p4, %s1228_s26, %s32_s17  }
  0x59   : > { %p41_p0 = por %p40_p12, %p39_p8  ;;  %p1437_p5 = por %p1604_p3, %p39_p8 }
  0x5a   : > { %s269_s20 = sand.u32 1, %s1228_s26   ;;  %s751_s21 = sshll.u32 %s1232_s27, 7 }
  0x5b   : > { %s750_s16 = sshll.u32 %s269_s20, 3  ;;  %s1446_s23 = scalar_lea.hbm %s1586_s0, %s751_s21 }
  0x5c   : > { %s273_s29 = scalar_lea.vmem [#allocation2], %s750_s16  ;;  %p1448_p10 = pnand %p995_p6, %p41_p0 }
  0x5d   : > { %s280_s10 = sshll.u32 %s273_s29, 4  ;;  %s270_s14 = scalar_lea.sflag [#allocation3], %s269_s20  ;;  %s1452_s10 = int_to_ptr.vmem [resolvable:$true] %s280_s10 }
  0x5e   : > { %s1128_s8 = scalar_lea.hbm %s1446_s23, 128  ;;  %p1130_p9 = pneg %p1448_p10 }
  0x5f   : > { %p1129_p7 = scmp.ne.s32.totalorder %s1446_s23, %s1128_s8  ;;  %s1133_s21 = scalar_lea.hbm %s1586_s0, 512 }
  0x60   : > { %p1134_p1 = scmp.lt.u32.totalorder %s1446_s23, %s1586_s0  ;;  %p1135_p2 = scmp.lt.u32.totalorder %s1133_s21, %s1128_s8 }
  0x61   : > { %p1131_p11 = pnand %p1130_p9, %p1129_p7  ;;  %p1137_p8 = scmp.lt.u32.totalorder %s1128_s8, %s1446_s23 }
  0x62   : > { %p1136_p4 = por %p1135_p2, %p1134_p1 }
  0x63   : > { %p1132_p13 = pneg %p1131_p11 }
  0x64   : > { %p1138_p12 = por %p1137_p8, %p1136_p4 }
  0x66   : > { %p1139_p6 = pnand %p1138_p12, %p1132_p13 }
  0x68   : > { %1142 = shalt.err (!%p1139_p6)
}
  0x69   : > { %s1143_s20 = scalar_lea.vmem %s1452_s10, 128  ;;  %s1239_s15 = smov [#allocation2]  }
  0x6a   : > { %p1144_p0 = scmp.ne.s32.totalorder %s1452_s10, %s1143_s20  ;;  %s1148_s29 = sshll.u32 %s1239_s15, 4  ;;  %s1149_s29 = int_to_ptr.vmem [resolvable:$false] %s1148_s29 }
  0x6b   : > { %s1150_s12 = scalar_lea.vmem %s1149_s29, 256  ;;  %p1151_p11 = scmp.lt.s32.totalorder %s1452_s10, %s1149_s29 }
  0x6c   : > { %p1146_p3 = pnand %p1144_p0, %p1130_p9  ;;  %p1152_p1 = scmp.lt.s32.totalorder %s1150_s12, %s1143_s20 }
  0x6e   : > { %p1147_p7 = pneg %p1146_p3  ;;  %p1153_p2 = por %p1152_p1, %p1151_p11 }
  0x70   : > { %p1154_p4 = pnand %p1153_p2, %p1147_p7 }
  0x72   : > { %1157 = shalt.err (!%p1154_p4)
}
  0x73   : > { %987 = dma.hbm_to_vmem [thread:$0]  (!%p1448_p10), %s1446_s23, 128, %s1452_s10, %s270_s14  }
  0x74   : > { %p1607_p13 = scmp.ne.s32.totalorder %s1601_s9, 0 }
  0x75   : > { %s1482_s8 = sand.u32 (!%p1607_p13), 1, %s1224_s25   ;;  %p1608_p9 = scmp.ne.s32.totalorder (!%p1607_p13), %s1598_s30, 0 }
  0x76   : > { %289 = sbr.rel (%p1607_p13) target bundleno = 1126 (0x466), region = 48  ;;  %s753_s17 = sshll.u32 (!%p1607_p13), %s1482_s8, 3 }
  0x77   : > { %s292_s21 = scalar_lea.sflag (!%p1607_p13), [#allocation3], %s1482_s8  ;;  %s1488_s16 = scalar_lea.vmem (!%p1607_p13), [#allocation2], %s753_s17 }
  0x7d   : > { %1203 = dma.done.wait (%p1608_p9), %s292_s21, 128  }
  0x7e   : > { %1205 = vsyncadd (%p1608_p9), %s292_s21, 4294967168  ;;  %p1609_p10 = scmp.eq.s32.totalorder %s1305_s28, 0 }
  0x80   : > { %1207 = dma.done.wait (%p1609_p10), [#allocation6], 3072   ;;  %p1610_p8 = pmov %p1609_p10 }
  0x82   : > { %1209 = vsyncadd (%p1610_p8), [#allocation6], 4294964224  ;;  %p1611_p12 = pmov %p1610_p8 }
  0x83   : > { %p1612_p6 = pmov %p1610_p8 }
  0x84   : > { %1211 = dma.done.wait (%p1611_p12), [#allocation9], 2048  }
  0x85   : > { %1213 = vsyncadd (%p1612_p6), [#allocation9], 4294965248  ;;  %v1240_v0 = vmov 0.0|0.0   ;;  %vm1241_vm0 = vmmov 0   ;;  %v1242_v1 = vmov 0.0   ;;  %v339_v2 = vld [vmem:[#allocation5] sm:$0xff] }
  0x86   : > { %898 = vmatprep.subr.bf16.mxu0 %v1240_v0  ;;  %825 = vmatprep.mubr.msk.f32.mxu0 %vm1241_vm0, %v1242_v1  ;;  %v340_v3 = vld [vmem:[#allocation5 + $0x8] sm:$0xff]  ;;  %v341_v4 = vld [vmem:[#allocation5 + $0x10] sm:$0xff]  ;;  %v342_v6 = vld [vmem:[#allocation5 + $0x18] sm:$0xff]  ;;  %vm354_vm1 = vcmask 523264   ;;  %s763_s13 = sshll.u32 %s1305_s28, 7  ;;  %s337_s20 = scalar_lea.vmem [#allocation10], %s753_s17 }
  0x87   : > { %910 = vmatprep.subr.bf16.mxu1 %v1240_v0  ;;  %860 = vmatprep.mubr.msk.f32.mxu1 %vm1241_vm0, %v1242_v1  ;;  %v899_v5 = vpack.c.bf16 %v340_v3, %v339_v2  ;;  %v902_v7 = vpack.c.bf16 %v342_v6, %v341_v4  ;;  %v429_v8 = vld [vmem:[#allocation7] sm:$0xff]  ;;  %v430_v9 = vld [vmem:[#allocation7 + $0x8] sm:$0xff]  ;;  %v431_v10 = vld [vmem:[#allocation7 + $0x10] sm:$0xff]  ;;  %s645_s15 = sshll.u32 %s337_s20, 4  ;;  %s1542_s21 = scalar_lea.hbm %s1593_s7, %s763_s13  ;;  %s1544_s15 = int_to_ptr.vmem [resolvable:$true] %s645_s15 }
  0x88   : > { %v343_v11 = vld [vmem:[#allocation5 + $0x20] sm:$0xff]  ;;  %v344_v12 = vld [vmem:[#allocation5 + $0x28] sm:$0xff]  ;;  %v911_v13 = vpack.c.bf16 %v430_v9, %v429_v8  ;;  %v432_v14 = vld [vmem:[#allocation7 + $0x18] sm:$0xff]  ;;  %v616_v9 = vlaneseq  ;;  %s1158_s28 = scalar_lea.vmem %s1544_s15, 128  ;;  %s1243_s17 = smov [#allocation10]  }
  0x89   : > { %900 = vmatpush3.bf16.msra.mxu0 %v899_v5  ;;  %v914_v15 = vpack.c.bf16 %v432_v14, %v431_v10  ;;  %v905_v16 = vpack.c.bf16 %v344_v12, %v343_v11  ;;  %v433_v17 = vld [vmem:[#allocation7 + $0x20] sm:$0xff]  ;;  %v434_v18 = vld [vmem:[#allocation7 + $0x28] sm:$0xff]  ;;  %v345_v19 = vld [vmem:[#allocation5 + $0x30] sm:$0xff]  ;;  %p1159_p0 = scmp.ne.s32.totalorder %s1544_s15, %s1158_s28  ;;  %s1162_s30 = sshll.u32 %s1243_s17, 4  ;;  %s1163_s30 = int_to_ptr.vmem [resolvable:$false] %s1162_s30 }
  0x8a   : > { %901 = vmatprep.subr.bf16.mxu0 %v1240_v0  ;;  %912 = vmatpush3.bf16.msra.mxu1 %v911_v13  ;;  %v346_v20 = vld [vmem:[#allocation5 + $0x38] sm:$0xff]  ;;  %v917_v21 = vpack.c.bf16 %v434_v18, %v433_v17  ;;  %v435_v23 = vld [vmem:[#allocation7 + $0x30] sm:$0xff]  ;;  %v437_v27 = vld [vmem:[#allocation7 + $0x40] sm:$0xff]  ;;  %v617_v10 = vand.u32 127, %v616_v9  ;;  %s1164_s9 = scalar_lea.vmem %s1163_s30, 256  ;;  %p1165_p11 = scmp.lt.s32.totalorder %s1544_s15, %s1163_s30 }
  0x8b   : > { %913 = vmatprep.subr.bf16.mxu1 %v1240_v0  ;;  %v908_v22 = vpack.c.bf16 %v346_v20, %v345_v19  ;;  %v436_v24 = vld [vmem:[#allocation7 + $0x38] sm:$0xff]  ;;  %v438_v28 = vld [vmem:[#allocation7 + $0x48] sm:$0xff]  ;;  %v439_v30 = vld [vmem:[#allocation7 + $0x50] sm:$0xff]  ;;  %p1160_p3 = pnand %p1159_p0, %p1437_p5  ;;  %p1166_p1 = scmp.lt.s32.totalorder %s1164_s9, %s1158_s28 }
  0x8c   : > { %v920_v25 = vpack.c.bf16 %v436_v24, %v435_v23  ;;  %v338_v26 = vld [vmem:[%s1488_s16] sm:$0xff]  ;;  %v923_v29 = vpack.c.bf16 %v438_v28, %v437_v27  ;;  %v441_v33 = vld [vmem:[#allocation7 + $0x60] sm:$0xff]  ;;  %v442_v34 = vld [vmem:[#allocation7 + $0x68] sm:$0xff]  ;;  %vm618_vm2 = vcmp.lt.s32.totalorder %v617_v10, 10  ;;  %s632_s16 = scalar_lea.sflag [#allocation4], %s1482_s8 }
  0x8d   : > { %903 = vmatpush3.bf16.msra.mxu0 %v902_v7  ;;  %v440_v31 = vld [vmem:[#allocation7 + $0x58] sm:$0xff]  ;;  %v929_v35 = vpack.c.bf16 %v442_v34, %v441_v33  ;;  %v443_v36 = vld [vmem:[#allocation7 + $0x70] sm:$0xff]  ;;  %v523_v39 = vld [vmem:[#allocation8] sm:$0xff]  ;;  %p1161_p7 = pneg %p1160_p3  ;;  %p1167_p2 = por %p1166_p1, %p1165_p11 }
  0x8e   : > { %904 = vmatprep.subr.bf16.mxu0 %v1240_v0  ;;  %915 = vmatpush3.bf16.msra.mxu1 %v914_v15  ;;  %v926_v32 = vpack.c.bf16 %v440_v31, %v439_v30  ;;  %v444_v37 = vld [vmem:[#allocation7 + $0x78] sm:$0xff]  ;;  %v524_v40 = vld [vmem:[#allocation8 + $0x8] sm:$0xff]  ;;  %v525_v41 = vld [vmem:[#allocation8 + $0x10] sm:$0xff] }
  0x8f   : > { %916 = vmatprep.subr.bf16.mxu1 %v1240_v0  ;;  %v932_v38 = vpack.c.bf16 %v444_v37, %v443_v36  ;;  %v935_v42 = vpack.c.bf16 %v524_v40, %v523_v39  ;;  %v526_v43 = vld [vmem:[#allocation8 + $0x18] sm:$0xff]  ;;  %v527_v45 = vld [vmem:[#allocation8 + $0x20] sm:$0xff]  ;;  %v528_v46 = vld [vmem:[#allocation8 + $0x28] sm:$0xff]  ;;  %p1168_p4 = pnand %p1167_p2, %p1161_p7 }
  0x90   : > { %v938_v44 = vpack.c.bf16 %v526_v43, %v525_v41  ;;  %v941_v47 = vpack.c.bf16 %v528_v46, %v527_v45  ;;  %v529_v48 = vld [vmem:[#allocation8 + $0x30] sm:$0xff]  ;;  %v530_v49 = vld [vmem:[#allocation8 + $0x38] sm:$0xff]  ;;  %v531_v51 = vld [vmem:[#allocation8 + $0x40] sm:$0xff] }
  0x91   : > { %906 = vmatpush3.bf16.msra.mxu0 %v905_v16  ;;  %v944_v50 = vpack.c.bf16 %v530_v49, %v529_v48  ;;  %v532_v52 = vld [vmem:[#allocation8 + $0x48] sm:$0xff]  ;;  %v533_v54 = vld [vmem:[#allocation8 + $0x50] sm:$0xff]  ;;  %v534_v55 = vld [vmem:[#allocation8 + $0x58] sm:$0xff] }
  0x92   : > { %907 = vmatprep.subr.bf16.mxu0 %v1240_v0  ;;  %918 = vmatpush3.bf16.msra.mxu1 %v917_v21  ;;  %v947_v53 = vpack.c.bf16 %v532_v52, %v531_v51  ;;  %v950_v56 = vpack.c.bf16 %v534_v55, %v533_v54  ;;  %v535_v57 = vld [vmem:[#allocation8 + $0x60] sm:$0xff]  ;;  %v536_v58 = vld [vmem:[#allocation8 + $0x68] sm:$0xff]  ;;  %v758_v60 = vld [vmem:[%s1588_s2] ss:$0 sm:$0xff] }
  0x93   : > { %919 = vmatprep.subr.bf16.mxu1 %v1240_v0  ;;  %v953_v59 = vpack.c.bf16 %v536_v58, %v535_v57  ;;  %v537_v2 = vld [vmem:[#allocation8 + $0x70] sm:$0xff]  ;;  %v538_v3 = vld [vmem:[#allocation8 + $0x78] sm:$0xff] }
  0x94   : > { %v956_v4 = vpack.c.bf16 %v538_v3, %v537_v2  ;;  %v760_v5 = vld [vmem:[%s1590_s4] ss:$0 sm:$0xff] }
  0x95   : > { %909 = vmatpush3.bf16.msra.mxu0 %v908_v22  ;;  %v761_v11 = vld [vmem:[%s1592_s6] ss:$0 sm:$0xff] }
  0x96   : > { %934 = vmatprep.subr.bf16.mxu0 %v1240_v0  ;;  %921 = vmatpush3.bf16.msra.mxu1 %v920_v25 }
  0x97   : > { %922 = vmatprep.subr.bf16.mxu1 %v1240_v0 }
  0x98   : > { %826 = vmatmul.mubr.msk.f32.vlgmr.msra.gmra.mrb[0].mxu0 %vm354_vm1, %v338_v26 }
  0x99   : > { %895 = vmatprep.mubr.msk.f32.mxu0 %vm1241_vm0, %v1242_v1  ;;  %936 = vmatpush3.bf16.msra.mxu0 %v935_v42 }
  0x9a   : > { %924 = vmatpush3.bf16.msra.mxu1 %v923_v29  ;;  %937 = vmatprep.subr.bf16.mxu0 %v1240_v0 }
  0x9b   : > { %925 = vmatprep.subr.bf16.mxu1 %v1240_v0 }
  0x9d   : > { %939 = vmatpush3.bf16.msra.mxu0 %v938_v44 }
  0x9e   : > { %927 = vmatpush3.bf16.msra.mxu1 %v926_v32  ;;  %940 = vmatprep.subr.bf16.mxu0 %v1240_v0 }
  0x9f   : > { %928 = vmatprep.subr.bf16.mxu1 %v1240_v0 }
  0xa1   : > { %942 = vmatpush3.bf16.msra.mxu0 %v941_v47 }
  0xa2   : > { %930 = vmatpush3.bf16.msra.mxu1 %v929_v35  ;;  %943 = vmatprep.subr.bf16.mxu0 %v1240_v0 }
  0xa3   : > { %931 = vmatprep.subr.bf16.mxu1 %v1240_v0 }
  0xa5   : > { %945 = vmatpush3.bf16.msra.mxu0 %v944_v50 }
  0xa6   : > { %933 = vmatpush3.bf16.msra.mxu1 %v932_v38  ;;  %946 = vmatprep.subr.bf16.mxu0 %v1240_v0 }
  0xa9   : > { %948 = vmatpush3.bf16.msra.mxu0 %v947_v53 }
  0xaa   : > { %949 = vmatprep.subr.bf16.mxu0 %v1240_v0 }
  0xad   : > { %951 = vmatpush3.bf16.msra.mxu0 %v950_v56 }
  0xae   : > { %952 = vmatprep.subr.bf16.mxu0 %v1240_v0 }
  0xb1   : > { %954 = vmatpush3.bf16.msra.mxu0 %v953_v59 }
  0xb2   : > { %955 = vmatprep.subr.bf16.mxu0 %v1240_v0 }
  0xb5   : > { %957 = vmatpush3.bf16.msra.mxu0 %v956_v4 }
 0x16b   : > { %v424_v61 = vpop.f32.mrb[0].mxu0 }
 0x16c   : > { %v425_v62 = vadd.f32 %v758_v60, %v424_v61  ;;  %v827_v63 = vpop.f32.mrb[1].mxu0 }
 0x16e   : > { %v428_v1 = vmax.f32 %v425_v62, 0.0 }
 0x170   : > { %861 = vmatmul.mubr.f32.vlgmr.msra.gmra.mrb[0].mxu1 %v428_v1 }
 0x243   : > { %v518_v6 = vpop.f32.mrb[0].mxu1 }
 0x244   : > { %v519_v7 = vadd.f32 %v760_v5, %v518_v6  ;;  %v862_v0 = vpop.f32.mrb[1].mxu1 }
 0x246   : > { %v522_v8 = vmax.f32 %v519_v7, 0.0 }
 0x248   : > { %896 = vmatmul.mubr.f32.vlgmr.msra.gmra.mrb[2].mxu0 %v522_v8 }
 0x31b   : > { %v612_v12 = vpop.f32.mrb[2].mxu0 }
 0x31c   : > { %v613_v13 = vadd.f32 %v761_v11, %v612_v12  ;;  %v897_v14 = vpop.f32.mrb[3].mxu0 }
 0x31e   : > { %v619_v15 = vsel %vm618_vm2, %v613_v13, -inf }
 0x31f   : > { %620 = vmax.xlane.f32.xlu0 %v619_v15 }
 0x3ac   : > { %v621_v16 = vpop.xlane.xlu0 %620 }
 0x3ad   : > { %v622_v17 = vsub.f32 %v619_v15, %v621_v16 }
 0x3af   : > { %v623_v18 = vmul.f32 1.442695, %v622_v17 }
 0x3b1   : > { %1040 = vpow2.f32 %v623_v18 }
 0x3bb   : > { %v1041_v19 = vpop.eup %1040 }
 0x3bc   : > { %625 = vadd.xlane.f32.xlu0 %v1041_v19 }
 0x449   : > { %v626_v20 = vpop.xlane.xlu0 %625 }
 0x44a   : > { %1042 = vrcp.f32 %v626_v20 }
 0x454   : > { %v1043_v21 = vpop.eup %1042 }
 0x455   : > { %v628_v22 = vmul.f32 %v1043_v21, %v1041_v19 }
 0x457   : > { %v629_v23 = vsel %vm618_vm2, %v628_v22, %v613_v13 }
 0x458   : > { %630 = vst [vmem:[%s337_s20] sm:$0xff] %v629_v23 }
 0x459   : > { %1171 = shalt.err (!%p1168_p4)
}
 0x45a   : > { %s1172_s8 = scalar_lea.hbm %s1542_s21, 128  ;;  %s1176_s11 = scalar_lea.hbm %s1593_s7, 512 }
 0x45b   : > { %p1173_p13 = scmp.ne.s32.totalorder %s1542_s21, %s1172_s8  ;;  %p1177_p8 = scmp.lt.u32.totalorder %s1542_s21, %s1593_s7 }
 0x45c   : > { %p1178_p12 = scmp.lt.u32.totalorder %s1176_s11, %s1172_s8  ;;  %p1180_p0 = scmp.lt.u32.totalorder %s1172_s8, %s1542_s21 }
 0x45d   : > { %p1174_p9 = pnand %p1173_p13, %p1437_p5 }
 0x45e   : > { %p1179_p6 = por %p1178_p12, %p1177_p8 }
 0x45f   : > { %p1175_p10 = pneg %p1174_p9 }
 0x460   : > { %p1181_p3 = por %p1180_p0, %p1179_p6 }
 0x462   : > { %p1182_p7 = pnand %p1181_p3, %p1175_p10 }
 0x464   : > { %1185 = shalt.err (!%p1182_p7)
}
 0x465   : > { %972 = dma.vmem_to_hbm [thread:$0]  (%p1437_p5), %s1544_s15, 128, %s1542_s21, %s632_s16  }
 0x466 PF: > { %s1613_s20 = sld [smem:[#allocation15_spill]]  ;;  %p999_p11 = scmp.ge.s32.totalorder %s1232_s27, 2 }
 0x467   : > { %s657_s29 = sand.u32 1, %s1220_s24  }
 0x468   : > { %s658_s12 = scalar_lea.sflag [#allocation4], %s657_s29 }
 0x46c   : > { %p1614_p1 = scmp.ne.s32.totalorder %s1613_s20, 0 }
 0x46e   : > { %p989_p2 = pnand %p999_p11, %p1614_p1 }
 0x470   : > { %1215 = dma.done.wait (!%p989_p2), %s658_s12, 128  }
 0x471   : > { %1217 = vsyncadd (!%p989_p2), %s658_s12, 4294967168  ;;  %p22_p4 = scmp.ge.s32.totalorder %s1423_s22, 6   ;;  %s1615_s24 = smov %s1224_s25 }
 0x472   : > { %s1616_s25 = smov %s1228_s26  ;;  %s1617_s26 = smov %s1433_s18 }
 0x473   : > { %s1618_s27 = smov %s1423_s22  ;;  %24 = sbr.rel (!%p22_p4) target bundleno = 7 (0x7), region = 105 }
 0x47a   :  { %663 = vsyncpa [#allocation3], 1 }
 0x47b   :  { %665 = vsyncpa [#allocation3 + $0x1], 1 }
 0x47c   :  { %666 = vsyncpa [#allocation6], 1 }
 0x47d   :  { %667 = vsyncpa [#allocation9], 1 }
 0x47e   :  { %668 = vsyncpa [#allocation4], 1 }
 0x47f   :  { %670 = vsyncpa [#allocation4 + $0x1], 1 }

</bundles_post_ra>
